<compile_context>
chip_gen: v5e
topology: v5e:2x2
jax: 0.10.0
libtpu: 0.0.40
codegen_flags: <defaults>
</compile_context>

<pallas_src>
import functools

import jax
import jax.numpy as jnp
from jax.experimental import pallas as pl
from jax.experimental.pallas import tpu as pltpu


def _round_up(x, m):
    return ((x + m - 1) // m) * m


def qnetwork_kernel(x_ref, w1_ref, b1_ref, w2_ref, b2_ref, w3_ref, b3_ref,
                    out_ref):
    # Cast activations to bf16 only at the MXU inputs; accumulate in f32.
    # Bias-add / ReLU stay f32 (v5e-safe VPU path).
    x = x_ref[...].astype(jnp.bfloat16)
    h1 = jnp.dot(x, w1_ref[...], preferred_element_type=jnp.float32)
    h1 = jnp.maximum(h1 + b1_ref[...], 0.0)
    h2 = jnp.dot(h1.astype(jnp.bfloat16), w2_ref[...],
                 preferred_element_type=jnp.float32)
    h2 = jnp.maximum(h2 + b2_ref[...], 0.0)
    h3 = jnp.dot(h2.astype(jnp.bfloat16), w3_ref[...],
                 preferred_element_type=jnp.float32)
    out_ref[...] = (h3 + b3_ref[...]).astype(out_ref.dtype)


@functools.partial(jax.jit, static_argnames=("tile_b",))
def qnetwork_forward(state, params, *, tile_b=4096):
    """state: (B, state_size) f32. Returns (B, action_size) f32."""
    w1, b1, w2, b2, w3, b3 = params
    B, S = state.shape
    H = w1.shape[1]
    A = w3.shape[1]

    # Batch tile: 16-aligned (bf16 sublane packing). Clamp to ceil(B/2) so the
    # grid has >= 2 steps whenever the batch allows it (v7x 2-TC split); tiny
    # batches collapse to a single step.
    TB = min(_round_up(tile_b, 16), _round_up(pl.cdiv(B, 2), 16))
    TB = max(TB, 16)
    grid = (pl.cdiv(B, TB),)

    # bf16 weights feed the MXU directly; biases stay f32. All are resident.
    w1b = w1.astype(jnp.bfloat16)
    w2b = w2.astype(jnp.bfloat16)
    w3b = w3.astype(jnp.bfloat16)

    const2d = lambda i: (0, 0)

    flops = 2 * grid[0] * TB * (S * H + H * H + H * A)
    bytes_accessed = (
        B * S * 4 + B * A * 4                 # state in, Q-values out (f32)
        + (S * H + H * H + H * A) * 2         # bf16 weights (resident, once)
        + (H + H + A) * 4                     # f32 biases
    )

    out = pl.pallas_call(
        qnetwork_kernel,
        out_shape=jax.ShapeDtypeStruct((B, A), jnp.float32),
        grid=grid,
        in_specs=[
            pl.BlockSpec((TB, S), lambda i: (i, 0)),   # state: streamed per tile
            pl.BlockSpec((S, H), const2d),             # weights/biases: resident
            pl.BlockSpec((1, H), const2d),
            pl.BlockSpec((H, H), const2d),
            pl.BlockSpec((1, H), const2d),
            pl.BlockSpec((H, A), const2d),
            pl.BlockSpec((1, A), const2d),
        ],
        out_specs=pl.BlockSpec((TB, A), lambda i: (i, 0)),
        compiler_params=pltpu.CompilerParams(
            dimension_semantics=("parallel",),
            vmem_limit_bytes=48 * 1024 * 1024),
        cost_estimate=pl.CostEstimate(
            flops=flops, transcendentals=0, bytes_accessed=bytes_accessed),
    )(state, w1b, b1, w2b, b2, w3b, b3)

    return out


def init_params(key, state_size, action_size, hidden=64):
    """Deterministic init mimicking PyTorch nn.Linear default:
    U(-1/sqrt(fan_in), 1/sqrt(fan_in)) for weight and bias. Weights stored as
    (in_features, out_features); biases as (1, out_features)."""
    def linear_init(k, fan_in, fan_out):
        kw, kb = jax.random.split(k)
        bound = 1.0 / jnp.sqrt(fan_in)
        w = jax.random.uniform(kw, (fan_in, fan_out), jnp.float32,
                               minval=-bound, maxval=bound)
        b = jax.random.uniform(kb, (1, fan_out), jnp.float32,
                               minval=-bound, maxval=bound)
        return w, b

    k1, k2, k3 = jax.random.split(key, 3)
    w1, b1 = linear_init(k1, state_size, hidden)
    w2, b2 = linear_init(k2, hidden, hidden)
    w3, b3 = linear_init(k3, hidden, action_size)
    return (w1, b1, w2, b2, w3, b3)


def qnetwork_ref(state, params):
    """Pure-JAX f32 reference for correctness checking."""
    w1, b1, w2, b2, w3, b3 = params
    h1 = jnp.maximum(state @ w1 + b1, 0.0)
    h2 = jnp.maximum(h1 @ w2 + b2, 0.0)
    return h2 @ w3 + b3


if __name__ == "__main__":
    # LunarLander-v2: state_size=8, action_size=4.
    state_size, action_size = 8, 4

    key = jax.random.PRNGKey(0)
    k_params, k_s1, k_s2 = jax.random.split(key, 3)
    params = init_params(k_params, state_size, action_size)

    # Small batch (single grid step).
    state_small = jax.random.normal(k_s1, (8, state_size), jnp.float32)
    out_small = qnetwork_forward(state_small, params)
    jax.block_until_ready(out_small)
    ref_small = qnetwork_ref(state_small, params)
    assert out_small.shape == (8, action_size)
    # bf16 MXU inputs with f32 accumulation -> relaxed tolerance vs f32 ref.
    assert jnp.allclose(out_small, ref_small, atol=5e-2, rtol=5e-2)

    # Batch that is not a multiple of the tile (exercises the partial boundary
    # block: clipped writeback, no wrapper pad/slice).
    state_odd = jax.random.normal(k_s2, (50, state_size), jnp.float32)
    out_odd = qnetwork_forward(state_odd, params, tile_b=32)
    jax.block_until_ready(out_odd)
    ref_odd = qnetwork_ref(state_odd, params)
    assert out_odd.shape == (50, action_size)
    assert jnp.allclose(out_odd, ref_odd, atol=5e-2, rtol=5e-2)

    print("KERNEL_OK")
</pallas_src>

<mosaic_0001>
module attributes {stable_mosaic.version = 11 : i64} {
  func.func @qnetwork_kernel(%arg0: i32, %arg1: memref<16x8xf32, #tpu.memory_space<vmem>>, %arg2: memref<8x64xbf16, #tpu.memory_space<vmem>>, %arg3: memref<1x64xf32, #tpu.memory_space<vmem>>, %arg4: memref<64x64xbf16, #tpu.memory_space<vmem>>, %arg5: memref<1x64xf32, #tpu.memory_space<vmem>>, %arg6: memref<64x4xbf16, #tpu.memory_space<vmem>>, %arg7: memref<1x4xf32, #tpu.memory_space<vmem>>, %arg8: memref<16x4xf32, #tpu.memory_space<vmem>>) attributes {dimension_semantics = [#tpu.dimension_semantics<parallel>], iteration_bounds = array<i64: 1>, scalar_prefetch = 0 : i64, scratch_operands = 0 : i64, tpu.core_type = #tpu.core_type<tc>, window_params = [{transform_indices = @transform_0, window_bounds = array<i64: 16, 8>}, {pipeline_mode = #tpu.pipeline_mode<synchronous>, transform_indices = @transform_1, window_bounds = array<i64: 8, 64>}, {pipeline_mode = #tpu.pipeline_mode<synchronous>, transform_indices = @transform_2, window_bounds = array<i64: 1, 64>}, {pipeline_mode = #tpu.pipeline_mode<synchronous>, transform_indices = @transform_3, window_bounds = array<i64: 64, 64>}, {pipeline_mode = #tpu.pipeline_mode<synchronous>, transform_indices = @transform_4, window_bounds = array<i64: 1, 64>}, {pipeline_mode = #tpu.pipeline_mode<synchronous>, transform_indices = @transform_5, window_bounds = array<i64: 64, 4>}, {pipeline_mode = #tpu.pipeline_mode<synchronous>, transform_indices = @transform_6, window_bounds = array<i64: 1, 4>}, {transform_indices = @transform_7, window_bounds = array<i64: 16, 4>}]} {
    %c0 = arith.constant 0 : index
    %c0_0 = arith.constant 0 : index
    %0 = vector.load %arg1[%c0, %c0_0] : memref<16x8xf32, #tpu.memory_space<vmem>>, vector<16x8xf32>
    %1 = arith.truncf %0 : vector<16x8xf32> to vector<16x8xbf16>
    %c0_1 = arith.constant 0 : index
    %c0_2 = arith.constant 0 : index
    %2 = vector.load %arg2[%c0_1, %c0_2] : memref<8x64xbf16, #tpu.memory_space<vmem>>, vector<8x64xbf16>
    %cst = arith.constant dense<0.000000e+00> : vector<16x64xf32>
    %3 = tpu.matmul %1, %2, %cst {dimension_numbers = #tpu.dot_dimension_numbers<[1], [0], [0], [1], [0, 0, 1, 1], [], []>} : vector<16x8xbf16>, vector<8x64xbf16>, vector<16x64xf32> -> vector<16x64xf32>
    %c0_3 = arith.constant 0 : index
    %c0_4 = arith.constant 0 : index
    %4 = vector.load %arg3[%c0_3, %c0_4] : memref<1x64xf32, #tpu.memory_space<vmem>>, vector<1x64xf32>
    %5 = vector.broadcast %4 : vector<1x64xf32> to vector<16x64xf32>
    %6 = arith.addf %3, %5 : vector<16x64xf32>
    %cst_5 = arith.constant 0.000000e+00 : f32
    %7 = vector.broadcast %cst_5 : f32 to vector<16x64xf32>
    %8 = arith.maximumf %6, %7 : vector<16x64xf32>
    %9 = arith.truncf %8 : vector<16x64xf32> to vector<16x64xbf16>
    %c0_6 = arith.constant 0 : index
    %c0_7 = arith.constant 0 : index
    %10 = vector.load %arg4[%c0_6, %c0_7] : memref<64x64xbf16, #tpu.memory_space<vmem>>, vector<64x64xbf16>
    %cst_8 = arith.constant dense<0.000000e+00> : vector<16x64xf32>
    %11 = tpu.matmul %9, %10, %cst_8 {dimension_numbers = #tpu.dot_dimension_numbers<[1], [0], [0], [1], [0, 0, 1, 1], [], []>} : vector<16x64xbf16>, vector<64x64xbf16>, vector<16x64xf32> -> vector<16x64xf32>
    %c0_9 = arith.constant 0 : index
    %c0_10 = arith.constant 0 : index
    %12 = vector.load %arg5[%c0_9, %c0_10] : memref<1x64xf32, #tpu.memory_space<vmem>>, vector<1x64xf32>
    %13 = vector.broadcast %12 : vector<1x64xf32> to vector<16x64xf32>
    %14 = arith.addf %11, %13 : vector<16x64xf32>
    %cst_11 = arith.constant 0.000000e+00 : f32
    %15 = vector.broadcast %cst_11 : f32 to vector<16x64xf32>
    %16 = arith.maximumf %14, %15 : vector<16x64xf32>
    %17 = arith.truncf %16 : vector<16x64xf32> to vector<16x64xbf16>
    %c0_12 = arith.constant 0 : index
    %c0_13 = arith.constant 0 : index
    %18 = vector.load %arg6[%c0_12, %c0_13] : memref<64x4xbf16, #tpu.memory_space<vmem>>, vector<64x4xbf16>
    %cst_14 = arith.constant dense<0.000000e+00> : vector<16x4xf32>
    %19 = tpu.matmul %17, %18, %cst_14 {dimension_numbers = #tpu.dot_dimension_numbers<[1], [0], [0], [1], [0, 0, 1, 1], [], []>} : vector<16x64xbf16>, vector<64x4xbf16>, vector<16x4xf32> -> vector<16x4xf32>
    %c0_15 = arith.constant 0 : index
    %c0_16 = arith.constant 0 : index
    %20 = vector.load %arg7[%c0_15, %c0_16] : memref<1x4xf32, #tpu.memory_space<vmem>>, vector<1x4xf32>
    %21 = vector.broadcast %20 : vector<1x4xf32> to vector<16x4xf32>
    %22 = arith.addf %19, %21 : vector<16x4xf32>
    %c0_17 = arith.constant 0 : index
    %c0_18 = arith.constant 0 : index
    %23 = vector.load %arg8[%c0_17, %c0_18] : memref<16x4xf32, #tpu.memory_space<vmem>>, vector<16x4xf32>
    tpu.vector_store %arg8[%c0_17, %c0_18], %22 {strides = array<i32>} : memref<16x4xf32, #tpu.memory_space<vmem>>, vector<16x4xf32>,
    return
  }
  func.func @transform_0(%arg0: i32) -> (i32, i32) {
    %c0_i32 = arith.constant 0 : i32
    %c0_i32_0 = arith.constant 0 : i32
    return %arg0, %c0_i32 : i32, i32
  }
  func.func @transform_1(%arg0: i32) -> (i32, i32) {
    %c0_i32 = arith.constant 0 : i32
    %c0_i32_0 = arith.constant 0 : i32
    %c0_i32_1 = arith.constant 0 : i32
    return %c0_i32, %c0_i32_0 : i32, i32
  }
  func.func @transform_2(%arg0: i32) -> (i32, i32) {
    %c0_i32 = arith.constant 0 : i32
    %c0_i32_0 = arith.constant 0 : i32
    %c0_i32_1 = arith.constant 0 : i32
    return %c0_i32, %c0_i32_0 : i32, i32
  }
  func.func @transform_3(%arg0: i32) -> (i32, i32) {
    %c0_i32 = arith.constant 0 : i32
    %c0_i32_0 = arith.constant 0 : i32
    %c0_i32_1 = arith.constant 0 : i32
    return %c0_i32, %c0_i32_0 : i32, i32
  }
  func.func @transform_4(%arg0: i32) -> (i32, i32) {
    %c0_i32 = arith.constant 0 : i32
    %c0_i32_0 = arith.constant 0 : i32
    %c0_i32_1 = arith.constant 0 : i32
    return %c0_i32, %c0_i32_0 : i32, i32
  }
  func.func @transform_5(%arg0: i32) -> (i32, i32) {
    %c0_i32 = arith.constant 0 : i32
    %c0_i32_0 = arith.constant 0 : i32
    %c0_i32_1 = arith.constant 0 : i32
    return %c0_i32, %c0_i32_0 : i32, i32
  }
  func.func @transform_6(%arg0: i32) -> (i32, i32) {
    %c0_i32 = arith.constant 0 : i32
    %c0_i32_0 = arith.constant 0 : i32
    %c0_i32_1 = arith.constant 0 : i32
    return %c0_i32, %c0_i32_0 : i32, i32
  }
  func.func @transform_7(%arg0: i32) -> (i32, i32) {
    %c0_i32 = arith.constant 0 : i32
    %c0_i32_0 = arith.constant 0 : i32
    return %arg0, %c0_i32 : i32, i32
  }
}

</mosaic_0001>

<bundles_post_ra>
// kernel: qnetwork_forward.1
= control target key start
LH: loop header
LB: loop body
LE: loop exit
PB: predicated region body
PF: predicated region fallthrough
CT: control target
= control target key end

     0   :  { %vm39_vm0 = vcmask 1043456   ;;  %vm35_vm1 = vcmask 64512   ;;  %vm96_vm2 = vcmask 523264   ;;  %vm170_vm3 = vcmask 31744   ;;  %s347_s0 = inlined_call_operand.vmem [shape: f32[8,8], index: 0, kind: input, shape index: {}]   ;;  %s348_s1 = inlined_call_operand.vmem [shape: bf16[8,64], index: 1, kind: input, shape index: {}]   ;;  %s349_s2 = inlined_call_operand.vmem [shape: f32[1,64], index: 2, kind: input, shape index: {}]   ;;  %s350_s3 = inlined_call_operand.vmem [shape: bf16[64,64], index: 3, kind: input, shape index: {}]   ;;  %s351_s4 = inlined_call_operand.vmem [shape: f32[1,64], index: 4, kind: input, shape index: {}]   ;;  %s352_s5 = inlined_call_operand.vmem [shape: bf16[64,4], index: 5, kind: input, shape index: {}]   ;;  %s353_s6 = inlined_call_operand.vmem [shape: f32[1,4], index: 6, kind: input, shape index: {}]   ;;  %s354_s7 = inlined_call_operand.vmem [shape: f32[8,4], index: 7, kind: output, shape index: {}]  }
   0x1   :  { %v30_v0 = vld [vmem:[%s348_s1] sm:$0xf]  ;;  %v28_v2 = vld [vmem:[%s347_s0 + $0x8] sm:$0xff]  ;;  %v252_v5 = vld [vmem:[%s350_s3 + $0x18] sm:$0xff] }
   0x2   :  { %v27_v1 = vld [vmem:[%s347_s0] sm:$0xff]  ;;  %v41_v3 = vsel %vm39_vm0, %v30_v0, 0  ;;  %104 = vmatpush.bf16.msra.mxu1 %v252_v5  ;;  %v251_v6 = vld [vmem:[%s350_s3 + $0x10] sm:$0xff]  ;;  %v250_v7 = vld [vmem:[%s350_s3 + $0x8] sm:$0xff] }
   0x3   :  { %v29_v4 = vpack.c.bf16 %v28_v2, %v27_v1  ;;  %50 = vmatpush.bf16.msra.mxu0 %v41_v3  ;;  %v249_v8 = vld [vmem:[%s350_s3] sm:$0xff]  ;;  %v256_v17 = vld [vmem:[%s352_s5 + $0x18] sm:$0xff]  ;;  %v255_v18 = vld [vmem:[%s352_s5 + $0x10] sm:$0xff] }
   0x4   :  { %v257_v10 = vld [vmem:[%s349_s2] ss:$0 sm:$0xff]  ;;  %160 = vmatpush.bf16.msra.mxu2 %v256_v17  ;;  %v254_v19 = vld [vmem:[%s352_s5 + $0x8] sm:$0xff] }
   0x5   :  { %v253_v20 = vld [vmem:[%s352_s5] sm:$0xff] }
   0x6   :  { %214 = vmatmul.msk.bf16.vlgmr.msra.gmra.mxu0 %vm35_vm1, %v29_v4  ;;  %105 = vmatpush.bf16.msra.mxu1 %v251_v6  ;;  %v258_v22 = vld [vmem:[%s351_s4] ss:$0 sm:$0xff] }
   0x7   :  { %v259_v29 = vld [vmem:[%s353_s6] ss:$0 sm:$0xff] }
   0x8   :  { %161 = vmatpush.bf16.msra.mxu2 %v255_v18 }
   0xa   :  { %106 = vmatpush.bf16.msra.mxu1 %v250_v7 }
   0xc   :  { %162 = vmatpush.bf16.msra.mxu2 %v254_v19 }
   0xe   :  { %107 = vmatpush.bf16.msra.mxu1 %v249_v8 }
  0x10   :  { %163 = vmatpush.bf16.msra.mxu2 %v253_v20 }
  0x83   :  { %v52_v9 = vpop.f32.mrf.mxu0 }
  0x84   :  { %v53_v11 = vadd.f32 %v257_v10, %v52_v9 }
  0x86   :  { %v57_v14 = vmax.f32 %v53_v11, 0.0 }
  0x8b   :  { %v54_v12 = vpop.f32.mrf.mxu0 }
  0x8c   :  { %v55_v13 = vadd.f32 %v257_v10, %v54_v12 }
  0x8e   :  { %v58_v15 = vmax.f32 %v55_v13, 0.0 }
  0x90   :  { %v59_v16 = vpack.c.bf16 %v58_v15, %v57_v14 }
  0x92   :  { %231 = vmatmul.msk.bf16.vlgmr.msra.gmra.mxu1 %vm96_vm2, %v59_v16 }
 0x10f   :  { %v109_v21 = vpop.f32.mrf.mxu1 }
 0x110   :  { %v110_v23 = vadd.f32 %v258_v22, %v109_v21 }
 0x112   :  { %v114_v26 = vmax.f32 %v110_v23, 0.0 }
 0x117   :  { %v111_v24 = vpop.f32.mrf.mxu1 }
 0x118   :  { %v112_v25 = vadd.f32 %v258_v22, %v111_v24 }
 0x11a   :  { %v115_v27 = vmax.f32 %v112_v25, 0.0 }
 0x11c   :  { %v116_v28 = vpack.c.bf16 %v115_v27, %v114_v26 }
 0x11e   :  { %248 = vmatmul.msk.bf16.vlgmr.msra.gmra.mxu2 %vm96_vm2, %v116_v28 }
 0x1a1   :  { %v165_v30 = vpop.f32.mrf.mxu2 }
 0x1a2   :  { %v166_v31 = vadd.f32 %v259_v29, %v165_v30 }
 0x1a4   :  { %171 = vst.msk [vmem:[#allocation2] sm:$0xff] %vm170_vm3, %v166_v31 }
 0x1a9   :  { %v167_v32 = vpop.f32.mrf.mxu2 }
 0x1ab   :  { %v203_v33 = vld [vmem:[#allocation2] sm:$0xff] }
 0x1ac   :  { %204 = vst [vmem:[%s354_s7] sm:$0xff] %v203_v33 }

</bundles_post_ra>
